<compile_context>
chip_gen: v7x
topology: tpu7x:2x2x1
jax: 0.10.0
libtpu: 0.0.40
codegen_flags: <defaults>
</compile_context>

<pallas_src>
import functools

import jax
import jax.numpy as jnp
from jax.experimental import pallas as pl
from jax.experimental.pallas import tpu as pltpu


def _attention_kernel(x_ref, wqkv_ref, wp_ref, bp_ref, o_ref, acc_ref,
                      *, num_heads, head_dim, exp_dtype):
    Bb, N, C = x_ref.shape  # block of batch elements, full sequence, channels

    # ---- fused QKV projection (bf16 MXU, f32 accumulate) --------------------
    # Softmax scale is already folded into the Q columns of wqkv; the whole
    # result is downcast to bf16 once (single bulk cast, halved live size).
    x2 = x_ref[...].reshape(Bb * N, C)                                # bf16
    qkv = jnp.dot(x2, wqkv_ref[...],
                  preferred_element_type=jnp.float32)                 # (Bb*N, 3C) f32
    qkv = qkv.astype(jnp.bfloat16).reshape(Bb, N, 3 * C)              # bf16

    # Output-projection accumulator starts at the bias (f32, full lane width).
    acc_ref[...] = jnp.broadcast_to(bp_ref[...], acc_ref.shape)

    # ---- per-head attention + per-head projection accumulate ----------------
    for h in range(num_heads):
        lo = h * head_dim
        qh = qkv[:, :, lo:lo + head_dim]                  # (Bb, N, hd) bf16
        kh = qkv[:, :, C + lo:C + lo + head_dim]          # (Bb, N, hd) bf16
        vh = qkv[:, :, 2 * C + lo:2 * C + lo + head_dim]  # (Bb, N, hd) bf16

        # NT score contraction (no explicit k transpose), f32 accumulate.
        s = jnp.einsum('bnd,bmd->bnm', qh, kh,
                       preferred_element_type=jnp.float32)            # (Bb, N, N)

        # Numerically stable softmax; the normalization is applied to the
        # smaller (N, hd) context instead of the (N, N) probabilities.
        m = jnp.max(s, axis=-1, keepdims=True)
        p = jnp.exp((s - m).astype(exp_dtype))
        l = jnp.sum(p, axis=-1, keepdims=True, dtype=jnp.float32)     # (Bb, N, 1)

        oh = jnp.einsum('bnm,bmd->bnd', p.astype(jnp.bfloat16), vh,
                        preferred_element_type=jnp.float32)           # (Bb, N, hd)
        oh = oh * pl.reciprocal(l, approx=True)

        # Output projection for this head: Wp rows are a cheap sublane slice,
        # the accumulate store is full-lane (no ctx scratch / masked vst).
        acc_ref[...] += jnp.dot(
            oh.reshape(Bb * N, head_dim).astype(jnp.bfloat16),
            wp_ref[lo:lo + head_dim, :],
            preferred_element_type=jnp.float32)                       # (Bb*N, C)

    o_ref[...] = acc_ref[...].reshape(Bb, N, C).astype(o_ref.dtype)


def _pick_block_b(B, cap=4):
    """Largest divisor of B that is <= cap and leaves a grid of >= 2 steps
    whenever B >= 2 (so a v7x megacore can split the batch across both TCs)."""
    limit = min(cap, B // 2) if B > 1 else 1
    bb = max(limit, 1)
    while B % bb:
        bb -= 1
    return bb


def _default_exp_dtype():
    """bf16 exp only where the EUP has native bf16 (v6e / v7x); f32 elsewhere."""
    try:
        kind = jax.devices()[0].device_kind.lower()
    except Exception:  # pragma: no cover - fall back to the safe path
        return jnp.float32
    if ("v6" in kind) or ("v7" in kind) or ("7x" in kind):
        return jnp.bfloat16
    return jnp.float32


def prepare_attention_params(qkv_weight, proj_weight, proj_bias, *, num_heads):
    """One-time weight prep (hoist out of the per-call path).

    qkv_weight: (3C, C) torch nn.Linear layout (out, in), qkv_bias=False.
    proj_weight: (C, C) torch layout (out, in).  proj_bias: (C,).
    Returns (wqkv_bf16 (C,3C) with softmax scale folded into Q, wp_bf16 (C,C),
    bp_f32 (1,C)).
    """
    C = qkv_weight.shape[1]
    head_dim = C // num_heads
    scale = float(head_dim) ** (-0.5)
    wqkv = jnp.transpose(qkv_weight)                 # (C, 3C): [:, :C]=Q, [C:2C]=K, [2C:]=V
    wqkv = wqkv.at[:, :C].multiply(scale)            # fold attention scale into Q
    wqkv = wqkv.astype(jnp.bfloat16)
    wp = jnp.transpose(proj_weight).astype(jnp.bfloat16)   # (C, C)
    bp = proj_bias.reshape(1, C).astype(jnp.float32)        # (1, C)
    return wqkv, wp, bp


def attention_pallas(x, wqkv, wp, bp, *, num_heads, block_b=None,
                     out_dtype=None, exp_dtype=None):
    """x: (B, N, C).  wqkv/wp/bp: outputs of prepare_attention_params."""
    B, N, C = x.shape
    head_dim = C // num_heads

    if block_b is None:
        block_b = _pick_block_b(B)
    assert B % block_b == 0
    if out_dtype is None:
        out_dtype = x.dtype
    if exp_dtype is None:
        exp_dtype = _default_exp_dtype()

    x_bf = x.astype(jnp.bfloat16)
    out_itemsize = jnp.dtype(out_dtype).itemsize

    # VMEM budget: double-buffered x/out blocks and weights + f32 accumulator +
    # bf16 qkv block + f32 score blocks, with 2x headroom (capped for v7x).
    x_blk = block_b * N * C * 2
    out_blk = block_b * N * C * out_itemsize
    w_bytes = (3 * C * C + C * C) * 2 + C * 4
    acc_bytes = block_b * N * C * 4
    qkv_bytes = block_b * N * 3 * C * 2
    score_bytes = block_b * N * N * 4
    need = 2 * (x_blk + out_blk + w_bytes) + acc_bytes + qkv_bytes + 2 * score_bytes
    vmem_limit = int(min(64 * 1024 * 1024, max(16 * 1024 * 1024, 2 * need)))

    cost = pl.CostEstimate(
        flops=(2 * B * N * C * 3 * C                 # fused QKV projection
               + 4 * B * num_heads * N * N * head_dim  # QK^T and PV
               + 2 * B * N * C * C),                   # output projection
        transcendentals=B * num_heads * N * N,         # softmax exp
        bytes_accessed=(B * N * C * 2 + B * N * C * out_itemsize
                        + (3 * C * C + C * C) * 2 + C * 4),
    )

    kernel = functools.partial(
        _attention_kernel, num_heads=num_heads, head_dim=head_dim,
        exp_dtype=exp_dtype)

    return pl.pallas_call(
        kernel,
        out_shape=jax.ShapeDtypeStruct((B, N, C), out_dtype),
        grid_spec=pltpu.PrefetchScalarGridSpec(
            num_scalar_prefetch=0,
            grid=(B // block_b,),
            in_specs=[
                pl.BlockSpec((block_b, N, C), lambda b: (b, 0, 0)),  # x block
                pl.BlockSpec((C, 3 * C), lambda b: (0, 0)),          # fused Wqkv (bf16)
                pl.BlockSpec((C, C), lambda b: (0, 0)),              # Wproj (bf16)
                pl.BlockSpec((1, C), lambda b: (0, 0)),              # proj bias (f32)
            ],
            out_specs=pl.BlockSpec((block_b, N, C), lambda b: (b, 0, 0)),
            scratch_shapes=[pltpu.VMEM((block_b * N, C), jnp.float32)],  # proj acc
        ),
        compiler_params=pltpu.CompilerParams(
            dimension_semantics=("parallel",),
            vmem_limit_bytes=vmem_limit),
        cost_estimate=cost,
    )(x_bf, wqkv, wp, bp)


def attention_forward(x, qkv_weight, proj_weight, proj_bias, *, num_heads, **kw):
    """Convenience: torch-layout weights in, forward out (prep not cached)."""
    wqkv, wp, bp = prepare_attention_params(
        qkv_weight, proj_weight, proj_bias, num_heads=num_heads)
    return attention_pallas(x, wqkv, wp, bp, num_heads=num_heads, **kw)


def attention_reference(x, qkv_weight, proj_weight, proj_bias, *, num_heads):
    """Plain-JAX f32 reference mirroring the PyTorch forward (dropout = eval)."""
    B, N, C = x.shape
    head_dim = C // num_heads
    scale = head_dim ** (-0.5)
    qkv = x @ qkv_weight.T                                  # (B, N, 3C)
    qkv = qkv.reshape(B, N, 3, num_heads, head_dim)
    qkv = jnp.transpose(qkv, (2, 0, 3, 1, 4))               # (3, B, H, N, hd)
    q, k, v = qkv[0], qkv[1], qkv[2]
    attn = jnp.einsum("bhnd,bhmd->bhnm", q, k) * scale
    attn = jax.nn.softmax(attn, axis=-1)
    out = jnp.einsum("bhnm,bhmd->bhnd", attn, v)            # (B, H, N, hd)
    out = jnp.transpose(out, (0, 2, 1, 3)).reshape(B, N, C)
    return out @ proj_weight.T + proj_bias


if __name__ == "__main__":
    # Small shapes consistent with the module: B=2, N=8 tokens, C=32 channels, 2 heads.
    B, N, C = 2, 8, 32
    num_heads = 2

    key = jax.random.PRNGKey(0)
    kx, kqkv, kpw, kpb = jax.random.split(key, 4)

    x = jax.random.normal(kx, (B, N, C), dtype=jnp.float32)
    # Deterministic synthetic parameters (torch nn.Linear weight layout: (out, in)).
    qkv_weight = jax.random.normal(kqkv, (3 * C, C), dtype=jnp.float32) * 0.05
    proj_weight = jax.random.normal(kpw, (C, C), dtype=jnp.float32) * 0.05
    proj_bias = jax.random.normal(kpb, (C,), dtype=jnp.float32) * 0.05

    # Weight prep hoisted out of the per-call path; kernel call jitted.
    wqkv, wp, bp = prepare_attention_params(
        qkv_weight, proj_weight, proj_bias, num_heads=num_heads)
    fwd = jax.jit(functools.partial(attention_pallas, num_heads=num_heads))

    out = jax.block_until_ready(fwd(x, wqkv, wp, bp))

    ref = attention_reference(x, qkv_weight, proj_weight, proj_bias,
                              num_heads=num_heads)
    assert out.shape == (B, N, C)
    # bf16 MXU inputs with f32 accumulation -> compare at bf16-appropriate tolerance.
    assert jnp.allclose(out, ref, atol=2e-2, rtol=2e-2), (
        "Pallas output mismatch vs reference; max abs err = "
        f"{float(jnp.max(jnp.abs(out - ref)))}")

    print("KERNEL_OK")
</pallas_src>

<mosaic_0001>
module attributes {stable_mosaic.version = 11 : i64} {
  func.func @_attention_kernel(%arg0: i32, %arg1: memref<1x8x32xbf16, #tpu.memory_space<vmem>>, %arg2: memref<32x96xbf16, #tpu.memory_space<vmem>>, %arg3: memref<32x32xbf16, #tpu.memory_space<vmem>>, %arg4: memref<1x32xf32, #tpu.memory_space<vmem>>, %arg5: memref<1x8x32xf32, #tpu.memory_space<vmem>>, %arg6: memref<8x32xf32, #tpu.memory_space<vmem>>) attributes {dimension_semantics = [#tpu.dimension_semantics<parallel>], iteration_bounds = array<i64: 2>, scalar_prefetch = 0 : i64, scratch_operands = 1 : i64, tpu.core_type = #tpu.core_type<tc>, window_params = [{transform_indices = @transform_0, window_bounds = array<i64: 1, 8, 32>}, {pipeline_mode = #tpu.pipeline_mode<synchronous>, transform_indices = @transform_1, window_bounds = array<i64: 32, 96>}, {pipeline_mode = #tpu.pipeline_mode<synchronous>, transform_indices = @transform_2, window_bounds = array<i64: 32, 32>}, {pipeline_mode = #tpu.pipeline_mode<synchronous>, transform_indices = @transform_3, window_bounds = array<i64: 1, 32>}, {transform_indices = @transform_4, window_bounds = array<i64: 1, 8, 32>}]} {
    %c0 = arith.constant 0 : index
    %c0_0 = arith.constant 0 : index
    %c0_1 = arith.constant 0 : index
    %0 = vector.load %arg1[%c0, %c0_0, %c0_1] : memref<1x8x32xbf16, #tpu.memory_space<vmem>>, vector<1x8x32xbf16>
    %1 = vector.shape_cast %0 : vector<1x8x32xbf16> to vector<8x32xbf16>
    %c0_2 = arith.constant 0 : index
    %c0_3 = arith.constant 0 : index
    %2 = vector.load %arg2[%c0_2, %c0_3] : memref<32x96xbf16, #tpu.memory_space<vmem>>, vector<32x96xbf16>
    %cst = arith.constant dense<0.000000e+00> : vector<8x96xf32>
    %3 = tpu.matmul %1, %2, %cst {dimension_numbers = #tpu.dot_dimension_numbers<[1], [0], [0], [1], [0, 0, 1, 1], [], []>} : vector<8x32xbf16>, vector<32x96xbf16>, vector<8x96xf32> -> vector<8x96xf32>
    %4 = arith.truncf %3 : vector<8x96xf32> to vector<8x96xbf16>
    %5 = vector.shape_cast %4 : vector<8x96xbf16> to vector<1x8x96xbf16>
    %c0_4 = arith.constant 0 : index
    %c0_5 = arith.constant 0 : index
    %6 = vector.load %arg4[%c0_4, %c0_5] : memref<1x32xf32, #tpu.memory_space<vmem>>, vector<1x32xf32>
    %7 = vector.shape_cast %6 : vector<1x32xf32> to vector<1x32xf32>
    %8 = vector.broadcast %7 : vector<1x32xf32> to vector<8x32xf32>
    %c0_6 = arith.constant 0 : index
    %c0_7 = arith.constant 0 : index
    %9 = vector.load %arg6[%c0_6, %c0_7] : memref<8x32xf32, #tpu.memory_space<vmem>>, vector<8x32xf32>
    tpu.vector_store %arg6[%c0_6, %c0_7], %8 {strides = array<i32>} : memref<8x32xf32, #tpu.memory_space<vmem>>, vector<8x32xf32>,
    %10 = vector.extract_strided_slice %5 {offsets = [0, 0, 0], sizes = [1, 8, 16], strides = [1, 1, 1]} : vector<1x8x96xbf16> to vector<1x8x16xbf16>
    %11 = vector.extract_strided_slice %5 {offsets = [0, 0, 32], sizes = [1, 8, 16], strides = [1, 1, 1]} : vector<1x8x96xbf16> to vector<1x8x16xbf16>
    %12 = vector.extract_strided_slice %5 {offsets = [0, 0, 64], sizes = [1, 8, 16], strides = [1, 1, 1]} : vector<1x8x96xbf16> to vector<1x8x16xbf16>
    "tpu.trace_start"() <{level = 10 : i32, message = "bnd,bmd->bnm"}> : () -> ()
    %cst_8 = arith.constant dense<0.000000e+00> : vector<1x8x8xf32>
    %13 = tpu.matmul %10, %11, %cst_8 {dimension_numbers = #tpu.dot_dimension_numbers<[2], [2], [1], [1], [0, 0, 0, 1, 1, 1], [0], [0]>} : vector<1x8x16xbf16>, vector<1x8x16xbf16>, vector<1x8x8xf32> -> vector<1x8x8xf32>
    "tpu.trace_stop"() : () -> ()
    %cst_9 = arith.constant dense<0xFF800000> : vector<1x8xf32>
    %14 = vector.multi_reduction <maximumf>, %13, %cst_9 [2] : vector<1x8x8xf32> to vector<1x8xf32>
    %15 = vector.shape_cast %14 : vector<1x8xf32> to vector<1x8x1xf32>
    %16 = vector.broadcast %15 : vector<1x8x1xf32> to vector<1x8x8xf32>
    %17 = arith.subf %13, %16 : vector<1x8x8xf32>
    %18 = math.exp %17 : vector<1x8x8xf32>
    %cst_10 = arith.constant dense<0.000000e+00> : vector<1x8xf32>
    %19 = vector.multi_reduction <add>, %18, %cst_10 [2] : vector<1x8x8xf32> to vector<1x8xf32>
    %20 = vector.shape_cast %19 : vector<1x8xf32> to vector<1x8x1xf32>
    %21 = arith.truncf %18 : vector<1x8x8xf32> to vector<1x8x8xbf16>
    "tpu.trace_start"() <{level = 10 : i32, message = "bnm,bmd->bnd"}> : () -> ()
    %cst_11 = arith.constant dense<0.000000e+00> : vector<1x8x16xf32>
    %22 = tpu.matmul %21, %12, %cst_11 {dimension_numbers = #tpu.dot_dimension_numbers<[2], [1], [1], [2], [0, 0, 0, 1, 1, 2], [0], [0]>} : vector<1x8x8xbf16>, vector<1x8x16xbf16>, vector<1x8x16xf32> -> vector<1x8x16xf32>
    "tpu.trace_stop"() : () -> ()
    %23 = tpu.reciprocal %20 {approx = true} : vector<1x8x1xf32> -> vector<1x8x1xf32>
    %24 = vector.broadcast %23 : vector<1x8x1xf32> to vector<1x8x16xf32>
    %25 = arith.mulf %22, %24 : vector<1x8x16xf32>
    %c0_12 = arith.constant 0 : index
    %c0_13 = arith.constant 0 : index
    %26 = vector.load %arg6[%c0_12, %c0_13] : memref<8x32xf32, #tpu.memory_space<vmem>>, vector<8x32xf32>
    %27 = vector.shape_cast %25 : vector<1x8x16xf32> to vector<8x16xf32>
    %28 = arith.truncf %27 : vector<8x16xf32> to vector<8x16xbf16>
    %c0_14 = arith.constant 0 : index
    %c0_15 = arith.constant 0 : index
    %29 = vector.load %arg3[%c0_14, %c0_15] : memref<32x32xbf16, #tpu.memory_space<vmem>>, vector<16x32xbf16>
    %cst_16 = arith.constant dense<0.000000e+00> : vector<8x32xf32>
    %30 = tpu.matmul %28, %29, %cst_16 {dimension_numbers = #tpu.dot_dimension_numbers<[1], [0], [0], [1], [0, 0, 1, 1], [], []>} : vector<8x16xbf16>, vector<16x32xbf16>, vector<8x32xf32> -> vector<8x32xf32>
    %31 = arith.addf %26, %30 : vector<8x32xf32>
    %c0_17 = arith.constant 0 : index
    %c0_18 = arith.constant 0 : index
    %32 = vector.load %arg6[%c0_17, %c0_18] : memref<8x32xf32, #tpu.memory_space<vmem>>, vector<8x32xf32>
    tpu.vector_store %arg6[%c0_17, %c0_18], %31 {strides = array<i32>} : memref<8x32xf32, #tpu.memory_space<vmem>>, vector<8x32xf32>,
    %33 = vector.extract_strided_slice %5 {offsets = [0, 0, 16], sizes = [1, 8, 16], strides = [1, 1, 1]} : vector<1x8x96xbf16> to vector<1x8x16xbf16>
    %34 = vector.extract_strided_slice %5 {offsets = [0, 0, 48], sizes = [1, 8, 16], strides = [1, 1, 1]} : vector<1x8x96xbf16> to vector<1x8x16xbf16>
    %35 = vector.extract_strided_slice %5 {offsets = [0, 0, 80], sizes = [1, 8, 16], strides = [1, 1, 1]} : vector<1x8x96xbf16> to vector<1x8x16xbf16>
    "tpu.trace_start"() <{level = 10 : i32, message = "bnd,bmd->bnm"}> : () -> ()
    %cst_19 = arith.constant dense<0.000000e+00> : vector<1x8x8xf32>
    %36 = tpu.matmul %33, %34, %cst_19 {dimension_numbers = #tpu.dot_dimension_numbers<[2], [2], [1], [1], [0, 0, 0, 1, 1, 1], [0], [0]>} : vector<1x8x16xbf16>, vector<1x8x16xbf16>, vector<1x8x8xf32> -> vector<1x8x8xf32>
    "tpu.trace_stop"() : () -> ()
    %cst_20 = arith.constant dense<0xFF800000> : vector<1x8xf32>
    %37 = vector.multi_reduction <maximumf>, %36, %cst_20 [2] : vector<1x8x8xf32> to vector<1x8xf32>
    %38 = vector.shape_cast %37 : vector<1x8xf32> to vector<1x8x1xf32>
    %39 = vector.broadcast %38 : vector<1x8x1xf32> to vector<1x8x8xf32>
    %40 = arith.subf %36, %39 : vector<1x8x8xf32>
    %41 = math.exp %40 : vector<1x8x8xf32>
    %cst_21 = arith.constant dense<0.000000e+00> : vector<1x8xf32>
    %42 = vector.multi_reduction <add>, %41, %cst_21 [2] : vector<1x8x8xf32> to vector<1x8xf32>
    %43 = vector.shape_cast %42 : vector<1x8xf32> to vector<1x8x1xf32>
    %44 = arith.truncf %41 : vector<1x8x8xf32> to vector<1x8x8xbf16>
    "tpu.trace_start"() <{level = 10 : i32, message = "bnm,bmd->bnd"}> : () -> ()
    %cst_22 = arith.constant dense<0.000000e+00> : vector<1x8x16xf32>
    %45 = tpu.matmul %44, %35, %cst_22 {dimension_numbers = #tpu.dot_dimension_numbers<[2], [1], [1], [2], [0, 0, 0, 1, 1, 2], [0], [0]>} : vector<1x8x8xbf16>, vector<1x8x16xbf16>, vector<1x8x16xf32> -> vector<1x8x16xf32>
    "tpu.trace_stop"() : () -> ()
    %46 = tpu.reciprocal %43 {approx = true} : vector<1x8x1xf32> -> vector<1x8x1xf32>
    %47 = vector.broadcast %46 : vector<1x8x1xf32> to vector<1x8x16xf32>
    %48 = arith.mulf %45, %47 : vector<1x8x16xf32>
    %c0_23 = arith.constant 0 : index
    %c0_24 = arith.constant 0 : index
    %49 = vector.load %arg6[%c0_23, %c0_24] : memref<8x32xf32, #tpu.memory_space<vmem>>, vector<8x32xf32>
    %50 = vector.shape_cast %48 : vector<1x8x16xf32> to vector<8x16xf32>
    %51 = arith.truncf %50 : vector<8x16xf32> to vector<8x16xbf16>
    %c16 = arith.constant 16 : index
    %c0_25 = arith.constant 0 : index
    %52 = vector.load %arg3[%c16, %c0_25] : memref<32x32xbf16, #tpu.memory_space<vmem>>, vector<16x32xbf16>
    %cst_26 = arith.constant dense<0.000000e+00> : vector<8x32xf32>
    %53 = tpu.matmul %51, %52, %cst_26 {dimension_numbers = #tpu.dot_dimension_numbers<[1], [0], [0], [1], [0, 0, 1, 1], [], []>} : vector<8x16xbf16>, vector<16x32xbf16>, vector<8x32xf32> -> vector<8x32xf32>
    %54 = arith.addf %49, %53 : vector<8x32xf32>
    %c0_27 = arith.constant 0 : index
    %c0_28 = arith.constant 0 : index
    %55 = vector.load %arg6[%c0_27, %c0_28] : memref<8x32xf32, #tpu.memory_space<vmem>>, vector<8x32xf32>
    tpu.vector_store %arg6[%c0_27, %c0_28], %54 {strides = array<i32>} : memref<8x32xf32, #tpu.memory_space<vmem>>, vector<8x32xf32>,
    %c0_29 = arith.constant 0 : index
    %c0_30 = arith.constant 0 : index
    %56 = vector.load %arg6[%c0_29, %c0_30] : memref<8x32xf32, #tpu.memory_space<vmem>>, vector<8x32xf32>
    %57 = vector.shape_cast %56 : vector<8x32xf32> to vector<1x8x32xf32>
    %c0_31 = arith.constant 0 : index
    %c0_32 = arith.constant 0 : index
    %c0_33 = arith.constant 0 : index
    %58 = vector.load %arg5[%c0_31, %c0_32, %c0_33] : memref<1x8x32xf32, #tpu.memory_space<vmem>>, vector<1x8x32xf32>
    tpu.vector_store %arg5[%c0_31, %c0_32, %c0_33], %57 {strides = array<i32>} : memref<1x8x32xf32, #tpu.memory_space<vmem>>, vector<1x8x32xf32>,
    return
  }
  func.func @transform_0(%arg0: i32) -> (i32, i32, i32) {
    %c0_i32 = arith.constant 0 : i32
    %c0_i32_0 = arith.constant 0 : i32
    %c0_i32_1 = arith.constant 0 : i32
    return %arg0, %c0_i32, %c0_i32_0 : i32, i32, i32
  }
  func.func @transform_1(%arg0: i32) -> (i32, i32) {
    %c0_i32 = arith.constant 0 : i32
    %c0_i32_0 = arith.constant 0 : i32
    %c0_i32_1 = arith.constant 0 : i32
    return %c0_i32, %c0_i32_0 : i32, i32
  }
  func.func @transform_2(%arg0: i32) -> (i32, i32) {
    %c0_i32 = arith.constant 0 : i32
    %c0_i32_0 = arith.constant 0 : i32
    %c0_i32_1 = arith.constant 0 : i32
    return %c0_i32, %c0_i32_0 : i32, i32
  }
  func.func @transform_3(%arg0: i32) -> (i32, i32) {
    %c0_i32 = arith.constant 0 : i32
    %c0_i32_0 = arith.constant 0 : i32
    %c0_i32_1 = arith.constant 0 : i32
    return %c0_i32, %c0_i32_0 : i32, i32
  }
  func.func @transform_4(%arg0: i32) -> (i32, i32, i32) {
    %c0_i32 = arith.constant 0 : i32
    %c0_i32_0 = arith.constant 0 : i32
    %c0_i32_1 = arith.constant 0 : i32
    return %arg0, %c0_i32, %c0_i32_0 : i32, i32, i32
  }
}

</mosaic_0001>

<bundles_post_ra>
// kernel: attention_pallas.1
= control target key start
LH: loop header
LB: loop body
LE: loop exit
PB: predicated region body
PF: predicated region fallthrough
CT: control target
= control target key end

     0   :  { %9 = vsyncpa [#allocation4], 0  ;;  %s1177_s0 = inlined_call_operand.vmem [shape: bf16[2,8,32], index: 0, kind: input, shape index: {}]   ;;  %s1178_s1 = inlined_call_operand.vmem [shape: bf16[32,96], index: 1, kind: input, shape index: {}]   ;;  %s1179_s2 = inlined_call_operand.hbm [shape: bf16[32,32], index: 2, kind: input, shape index: {}]   ;;  %s1180_s3 = inlined_call_operand.vmem [shape: f32[1,32], index: 3, kind: input, shape index: {}]   ;;  %s1181_s4 = inlined_call_operand.hbm [shape: f32[2,8,32], index: 4, kind: output, shape index: {}]  }
   0x1   :  { %10 = vsyncpa [#allocation5], 0 }
   0x2   :  { %12 = vsyncpa [#allocation5 + $0x1], 0  ;;  %s984_s15 = smov 0   ;;  %s986_s16 = smov 0  }
   0x3   :  { %s988_s17 = smov 0   ;;  %s990_s18 = smov 0  }
   0x4 LB: > { %s1005_s19 = sadd.s32 4294967295, %s946_s18   ;;  %s698_s20 = sadd.s32 4294967294, %s946_s18   ;;  %s946_s18 = sphi %s990_s18, %s1197_s18   ;;  %s942_s17 = sphi %s988_s17, %s1196_s17   ;;  %s938_s16 = sphi %s986_s16, %s1195_s16   ;;  %s934_s15 = sphi %s984_s15, %s1194_s15  }
   0x5   : > { %s1009_s21 = sadd.s32 1, %s946_s18   ;;  %s114_s22 = sadd.s32 1, %s942_s17 }
   0x6   : > { %s111_s23 = ssub.s32 %s946_s18, %s1009_s21  ;;  %p124_p0 = scmp.ne.s32.totalorder %s942_s17, %s938_s16 }
   0x7   : > { %p112_p1 = scmp.eq.s32.totalorder %s111_s23, 0  ;;  %p125_p2 = scmp.eq.s32.totalorder %s1005_s19, 1 }
   0x8   : > { %p130_p3 = scmp.ne.s32.totalorder %s938_s16, %s934_s15  ;;  %p131_p4 = scmp.eq.s32.totalorder %s698_s20, 1 }
   0x9   : > { %s1020_s24 = scalar_select %p112_p1, %s942_s17, %s114_s22  }
   0xa   : > { %p1022_p5 = por %p125_p2, %p124_p0  ;;  %p1026_p6 = por %p131_p4, %p130_p3 }
   0xb   : > { %p699_p7 = scmp.ge.s32.totalorder %s946_s18, 1  ;;  %p138_p8 = scmp.lt.s32.totalorder %s946_s18, 3 }
   0xc   : > { %s1185_s25 = scalar_select %p1022_p5, 1, 0 }
   0xd   : > { %s1186_s26 = scalar_select %p1026_p6, 1, 0 }
   0xe   : > { %p1182_p9 = scmp.eq.s32.totalorder %s1005_s19, 0  ;;  %p1033_p10 = pnand %p699_p7, %p138_p8 }
   0xf   : > { %s948_s28 = smov [#allocation3]   ;;  %s852_s7 = scalar_lea.hbm %s1179_s2, 256 }
  0x10   : > { %s1187_s27 = scalar_select %p1033_p10, 1, 0 }
  0x11   : > { %s153_s29 = sshll.u32 %s948_s28, 4  ;;  %p787_p11 = pneg %p1033_p10  ;;  %s154_s29 = int_to_ptr.vmem [resolvable:$true] %s153_s29 }
  0x12   : > { %p853_p13 = scmp.ne.s32.totalorder %s1179_s2, %s852_s7  ;;  %p859_p3 = scmp.lt.u32.totalorder %s852_s7, %s1179_s2 }
  0x13   : > { %p1041_p12 = pnand %p1182_p9, %p787_p11 }
  0x15   : > { %p854_p0 = pneg %p1041_p12 }
  0x17   : > { %p855_p1 = pnand %p854_p0, %p853_p13 }
  0x19   : > { %p856_p2 = pneg %p855_p1 }
  0x1b   : > { %p861_p4 = pnand %p859_p3, %p856_p2 }
  0x1d   : > { %864 = shalt.err (!%p861_p4)
}
  0x1e   : > { %s865_s12 = scalar_lea.vmem %s154_s29, 256  ;;  %p873_p9 = scmp.lt.s32.totalorder %s154_s29, %s154_s29 }
  0x1f   : > { %p866_p7 = scmp.ne.s32.totalorder %s154_s29, %s865_s12  ;;  %p874_p6 = scmp.lt.s32.totalorder %s865_s12, %s865_s12 }
  0x21   : > { %p868_p8 = pnand %p866_p7, %p854_p0  ;;  %p875_p5 = por %p874_p6, %p873_p9 }
  0x23   : > { %p869_p11 = pneg %p868_p8 }
  0x25   : > { %p876_p10 = pnand %p875_p5, %p869_p11 }
  0x27   : > { %879 = shalt.err (!%p876_p10)
}
  0x28   : > { %s949_s13 = smov 64   ;;  %s950_s14 = smov 4  }
  0x29   : > { %790 = dma.hbm_to_vmem [thread:$0]  (!%p1041_p12), %s1179_s2, 256, %s154_s29, [#allocation4], %s949_s13, %s949_s13, %s950_s14  }
  0x2a   : > { %p1189_p13 = scmp.ne.s32.totalorder %s1187_s27, 0 }
  0x2b   : > { %p1190_p1 = scmp.eq.s32.totalorder (!%p1189_p13), %s1005_s19, 0 }
  0x2c   : > { %179 = sbr.rel (%p1189_p13) target bundleno = 1603 (0x643), region = 36 }
  0x33   : > { %925 = dma.done.wait (%p1190_p1), [#allocation4], 256   ;;  %p1191_p0 = pmov %p1190_p1 }
  0x34   : > { %p204_p5 = scmp.lt.s32.totalorder %s1005_s19, 1  ;;  %v951_v0 = vmov 0.0   ;;  %vm952_vm0 = vmmov 0   ;;  %v840_v1 = vld [vmem:[%s1178_s1] sm:$0xff]   ;;  %v841_v2 = vld [vmem:[%s1178_s1 + $0x8] sm:$0xff]   ;;  %vm226_vm1 = vcmask 261120  }
  0x35   : > { %927 = vsyncadd (%p1191_p0), [#allocation4], 4294967040  ;;  %737 = vmatprep.subr.bf16.mxu0 %v951_v0  ;;  %741 = vmatprep.mubr.msk.bf16.mxu0 %vm952_vm0, %v951_v0  ;;  %v709_v3 = vld [vmem:[%s1180_s3] ss:$0 sm:$0xff]  ;;  %s953_s11 = smov 64   ;;  %s954_s12 = smov 96  }
  0x36   : > { %745 = vmatprep.subr.bf16.mxu1 %v951_v0  ;;  %747 = vmatprep.mubr.msk.bf16.mxu1 %vm952_vm0, %v951_v0  ;;  %s205_s23 = scalar_select %p204_p5, %s1005_s19, 1  ;;  %278 = vst.msk [vmem:[#allocation2] sm:$0xff] %vm226_vm1, %v709_v3  ;;  %vm345_vm2 = vcmask 1043456   ;;  %vm282_vm3 = vcmask 130048   ;;  %vm329_vm4 = vcmask 64512   ;;  %v842_v28 = vld [vmem:[#allocation3] sm:$0xff]  }
  0x37   : > { %738 = vmatpush3.bf16.msra.mxu0 %v840_v1  ;;  %s955_s13 = smov 80   ;;  %s956_s14 = smov 112   ;;  %v843_v50 = vld [vmem:[#allocation3 + $0x8] sm:$0xff]  }
  0x38   : > { %s705_s29 = sshll.u32 %s205_s23, 2  ;;  %739 = vmatprep.subr.bf16.mxu0 %v951_v0  ;;  %s957_s20 = smov 48  }
  0x39   : > { %s207_s10 = scalar_lea.vmem %s1177_s0, %s705_s29  ;;  %s201_s22 = sand.u32 1, %s938_s16  }
  0x3a   : > { %v209_v4 = vld [vmem:[%s207_s10] sm:$0xf]  ;;  %s704_s23 = sshll.u32 %s201_s22, 3  ;;  %s719_s27 = sshll.u32 %s1005_s19, 7 }
  0x3b   : > { %740 = vmatpush3.bf16.msra.mxu0 %v841_v2  ;;  %s203_s28 = scalar_lea.vmem [#allocation6], %s704_s23  ;;  %s1134_s6 = scalar_lea.hbm %s1181_s4, %s719_s27 }
  0x3c   : > { %751 = vmatprep.subr.bf16.mxu0 %v951_v0  ;;  %s627_s29 = sshll.u32 %s203_s28, 4  ;;  %s614_s7 = scalar_lea.sflag [#allocation5], %s201_s22  ;;  %s1136_s29 = int_to_ptr.vmem [resolvable:$true] %s627_s29 }
  0x3d   : > { %v391_v51 = vld [vmem:[#allocation2] sm:$0xff]  ;;  %s880_s8 = scalar_lea.vmem %s1136_s29, 128  ;;  %p1192_p9 = scmp.ne.s32.totalorder %s1185_s25, 0 }
  0x3e   : > { %742 = vmatmul.mubr.msk.bf16.vlgmr.msra.gmra.mrb[0].mxu0 %vm226_vm1, %v209_v4  ;;  %p881_p6 = scmp.ne.s32.totalorder %s1136_s29, %s880_s8  ;;  %s958_s19 = smov [#allocation6]  }
  0x3f   : > { %753 = vmatprep.mubr.msk.bf16.mxu0 %vm952_vm0, %v951_v0  ;;  %s884_s9 = sshll.u32 %s958_s19, 4  ;;  %s885_s9 = int_to_ptr.vmem [resolvable:$false] %s884_s9 }
  0x40   : > { %p882_p10 = pnand %p881_p6, %p1192_p9  ;;  %s886_s10 = scalar_lea.vmem %s885_s9, 256 }
  0x41   : > { %p887_p2 = scmp.lt.s32.totalorder %s1136_s29, %s885_s9  ;;  %p888_p3 = scmp.lt.s32.totalorder %s886_s10, %s880_s8 }
  0x42   : > { %p883_p12 = pneg %p882_p10 }
  0x43   : > { %p889_p4 = por %p888_p3, %p887_p2 }
  0x45   : > { %p890_p7 = pnand %p889_p4, %p883_p12 }
 0x111   : > { %v264_v5 = vpop.f32.mrb[0].mxu0 }
 0x112   : > { %v1093_v6 = vpack.c.bf16 %v264_v5, %v264_v5  ;;  %v743_v7 = vpop.f32.mrb[1].mxu0 }
 0x113   : > { %v267_v8 = vpop.f32.mrb[2].mxu0 }
 0x114   : > { %340 = vrot.lane.b32.xlu1 %v1093_v6, %s953_s11  ;;  %280 = vrot.lane.b32.xlu0 %v1093_v6, %s954_s12  ;;  %v744_v9 = vpop.f32.mrb[3].mxu0 }
 0x118   : > { %448 = vrot.lane.b32.xlu1 %v1093_v6, %s955_s13 }
 0x11c   : > { %446 = vrot.lane.b32.xlu1 %v1093_v6, %s956_s14 }
 0x186   : > { %v341_v10 = vpop.permute.xlu1 %340  ;;  %v281_v11 = vpop.permute.xlu0 %280 }
 0x187   : > { %v347_v12 = vsel %vm345_vm2, %v341_v10, 0  ;;  %v287_v13 = vsel %vm282_vm3, %v281_v11, 0 }
 0x188   : > { %746 = vmatpush3.bf16.xpose.msra.mxu1 %v287_v13  ;;  %752 = vmatpush3.bf16.msra.mxu0 %v347_v12 }
 0x189   : > { %763 = vmatprep.subr.bf16.mxu0 %v951_v0  ;;  %757 = vmatprep.subr.bf16.mxu1 %v951_v0 }
 0x18a   : > { %v449_v23 = vpop.permute.xlu1 %448 }
 0x18b   : > { %v454_v26 = vsel %vm282_vm3, %v449_v23, 0 }
 0x18e   : > { %v447_v27 = vpop.permute.xlu1 %446 }
 0x18f   : > { %748 = vmatmul.mubr.msk.bf16.vlgmr.msra.gmra.mrb[0].mxu1 %vm282_vm3, %v1093_v6 }
 0x190   : > { %759 = vmatprep.mubr.msk.bf16.mxu1 %vm952_vm0, %v951_v0  ;;  %758 = vmatpush3.bf16.msra.mxu1 %v842_v28 }
 0x191   : > { %769 = vmatprep.subr.bf16.mxu1 %v951_v0 }
 0x262   : > { %v323_v14 = vpop.f32.mrb[0].mxu1 }
 0x263   : > { %v749_v15 = vpop.f32.mrb[1].mxu1  ;;  %v330_v16 = vsel %vm329_vm4, %v323_v14, -inf }
 0x264   : > { %331 = vmax.xlane.f32.xlu0 %v330_v16  ;;  %v326_v17 = vpop.f32.mrb[2].mxu1 }
 0x265   : > { %v750_v18 = vpop.f32.mrb[3].mxu1 }
 0x2f1   : > { %v332_v19 = vpop.xlane.xlu0 %331 }
 0x2f2   : > { %v333_v20 = vsub.f32 %v323_v14, %v332_v19 }
 0x2f4   : > { %v334_v21 = vmul.f32 1.442695, %v333_v20 }
 0x2f6   : > { %844 = vpow2.f32 %v334_v21 }
 0x300   : > { %v845_v22 = vpop.eup %844 }
 0x301   : > { %v336_v24 = vsel %vm329_vm4, %v845_v22, 0.0  ;;  %v339_v25 = vpack.c.bf16 %v845_v22, %v845_v22 }
 0x302   : > { %337 = vadd.xlane.f32.xlu1 %v336_v24 }
 0x303   : > { %754 = vmatmul.mubr.msk.bf16.vlgmr.msra.gmra.mrb[4].mxu0 %vm329_vm4, %v339_v25 }
 0x304   : > { %764 = vmatpush3.bf16.xpose.msra.mxu0 %v454_v26  ;;  %765 = vmatprep.mubr.msk.bf16.mxu0 %vm952_vm0, %v951_v0 }
 0x305   : > { %775 = vmatprep.subr.bf16.mxu0 %v951_v0 }
 0x30b   : > { %766 = vmatmul.mubr.msk.bf16.vlgmr.msra.gmra.mrb[8].mxu0 %vm282_vm3, %v447_v27 }
 0x30c   : > { %777 = vmatprep.mubr.msk.bf16.mxu0 %vm952_vm0, %v951_v0  ;;  %776 = vmatpush3.bf16.msra.mxu0 %v843_v50 }
 0x38f   : > { %v338_v29 = vpop.xlane.xlu1 %337 }
 0x390   : > { %846 = vrcp.f32 %v338_v29 }
 0x39a   : > { %v847_v30 = vpop.eup %846 }
 0x3d6   : > { %v383_v31 = vpop.f32.mrb[4].mxu0 }
 0x3d7   : > { %v390_v32 = vmul.f32 %v847_v30, %v383_v31  ;;  %v755_v33 = vpop.f32.mrb[5].mxu0 }
 0x3d8   : > { %v386_v34 = vpop.f32.mrb[6].mxu0 }
 0x3d9   : > { %v392_v35 = vpack.c.bf16 %v390_v32, %v390_v32  ;;  %v756_v36 = vpop.f32.mrb[7].mxu0 }
 0x3db   : > { %760 = vmatmul.mubr.msk.bf16.vlgmr.msra.gmra.mrb[4].mxu1 %vm282_vm3, %v392_v35 }
 0x3dc   : > { %771 = vmatprep.mubr.msk.bf16.mxu1 %vm952_vm0, %v951_v0 }
 0x3de   : > { %v490_v37 = vpop.f32.mrb[8].mxu0 }
 0x3df   : > { %v767_v38 = vpop.f32.mrb[9].mxu0  ;;  %v496_v39 = vsel %vm329_vm4, %v490_v37, -inf }
 0x3e0   : > { %497 = vmax.xlane.f32.xlu0 %v496_v39  ;;  %v493_v40 = vpop.f32.mrb[10].mxu0 }
 0x3e1   : > { %v768_v41 = vpop.f32.mrb[11].mxu0 }
 0x3f6   : > { %506 = vrot.lane.b32.xlu0 %v1093_v6, %s957_s20 }
 0x46d   : > { %v498_v42 = vpop.xlane.xlu0 %497 }
 0x46e   : > { %v499_v43 = vsub.f32 %v490_v37, %v498_v42 }
 0x470   : > { %v500_v44 = vmul.f32 1.442695, %v499_v43 }
 0x471   : > { %v507_v45 = vpop.permute.xlu0 %506 }
 0x472   : > { %848 = vpow2.f32 %v500_v44  ;;  %v512_v46 = vsel %vm345_vm2, %v507_v45, 0 }
 0x473   : > { %770 = vmatpush3.bf16.msra.mxu1 %v512_v46 }
 0x47c   : > { %v849_v47 = vpop.eup %848 }
 0x47d   : > { %v502_v48 = vsel %vm329_vm4, %v849_v47, 0.0  ;;  %v505_v49 = vpack.c.bf16 %v849_v47, %v849_v47 }
 0x47e   : > { %503 = vadd.xlane.f32.xlu1 %v502_v48 }
 0x47f   : > { %772 = vmatmul.mubr.msk.bf16.vlgmr.msra.gmra.mrb[8].mxu1 %vm329_vm4, %v505_v49 }
 0x4ae   : > { %v438_v52 = vpop.f32.mrb[4].mxu1 }
 0x4af   : > { %v444_v53 = vadd.f32 %v438_v52, %v391_v51  ;;  %v761_v54 = vpop.f32.mrb[5].mxu1 }
 0x4b0   : > { %v441_v55 = vpop.f32.mrb[6].mxu1 }
 0x4b1   : > { %445 = vst.msk [vmem:[#allocation2] sm:$0xff] %vm226_vm1, %v444_v53  ;;  %v762_v56 = vpop.f32.mrb[7].mxu1 }
 0x4b8   : > { %v556_v1 = vld [vmem:[#allocation2] sm:$0xff] }
 0x50b   : > { %v504_v57 = vpop.xlane.xlu1 %503 }
 0x50c   : > { %850 = vrcp.f32 %v504_v57 }
 0x516   : > { %v851_v58 = vpop.eup %850 }
 0x552   : > { %v548_v59 = vpop.f32.mrb[8].mxu1 }
 0x553   : > { %v555_v60 = vmul.f32 %v851_v58, %v548_v59  ;;  %v773_v61 = vpop.f32.mrb[9].mxu1 }
 0x554   : > { %v551_v62 = vpop.f32.mrb[10].mxu1 }
 0x555   : > { %v557_v63 = vpack.c.bf16 %v555_v60, %v555_v60  ;;  %v774_v0 = vpop.f32.mrb[11].mxu1 }
 0x557   : > { %778 = vmatmul.mubr.msk.bf16.vlgmr.msra.gmra.mrb[12].mxu0 %vm282_vm3, %v557_v63 }
 0x62a   : > { %v603_v2 = vpop.f32.mrb[12].mxu0 }
 0x62b   : > { %v609_v3 = vadd.f32 %v603_v2, %v556_v1  ;;  %v779_v4 = vpop.f32.mrb[13].mxu0 }
 0x62c   : > { %v606_v5 = vpop.f32.mrb[14].mxu0 }
 0x62d   : > { %610 = vst.msk [vmem:[#allocation2] sm:$0xff] %vm226_vm1, %v609_v3  ;;  %v780_v6 = vpop.f32.mrb[15].mxu0 }
 0x634   : > { %v611_v7 = vld [vmem:[#allocation2] sm:$0xff] }
 0x635   : > { %612 = vst.msk [vmem:[%s203_s28] sm:$0xff] %vm226_vm1, %v611_v7 }
 0x636   : > { %893 = shalt.err (!%p890_p7)
}
 0x637   : > { %s894_s11 = scalar_lea.hbm %s1134_s6, 128  ;;  %s898_s14 = scalar_lea.hbm %s1181_s4, 256 }
 0x638   : > { %p895_p8 = scmp.ne.s32.totalorder %s1134_s6, %s894_s11  ;;  %p899_p1 = scmp.lt.u32.totalorder %s1134_s6, %s1181_s4 }
 0x639   : > { %p900_p0 = scmp.lt.u32.totalorder %s898_s14, %s894_s11  ;;  %p902_p6 = scmp.lt.u32.totalorder %s894_s11, %s1134_s6 }
 0x63a   : > { %p896_p11 = pnand %p895_p8, %p1192_p9 }
 0x63b   : > { %p901_p5 = por %p900_p0, %p899_p1 }
 0x63c   : > { %p897_p13 = pneg %p896_p11 }
 0x63d   : > { %p903_p10 = por %p902_p6, %p901_p5 }
 0x63f   : > { %p904_p12 = pnand %p903_p10, %p897_p13 }
 0x641   : > { %907 = shalt.err (!%p904_p12)
}
 0x642   : > { %785 = dma.vmem_to_hbm [thread:$0]  (%p1192_p9), %s1136_s29, 128, %s1134_s6, %s614_s7  }
 0x643 PF: > { %p797_p2 = scmp.ge.s32.totalorder %s946_s18, 2  ;;  %s639_s23 = sand.u32 1, %s934_s15  }
 0x644   : > { %p1193_p3 = scmp.ne.s32.totalorder %s1186_s26, 0  ;;  %s640_s27 = scalar_lea.sflag [#allocation5], %s639_s23 }
 0x646   : > { %p792_p4 = pnand %p797_p2, %p1193_p3 }
 0x648   : > { %929 = dma.done.wait (!%p792_p4), %s640_s27, 128  }
 0x649   : > { %931 = vsyncadd (!%p792_p4), %s640_s27, 4294967168  ;;  %p15_p7 = scmp.ge.s32.totalorder %s1009_s21, 4   ;;  %s1194_s15 = smov %s938_s16 }
 0x64a   : > { %s1195_s16 = smov %s942_s17  ;;  %s1196_s17 = smov %s1020_s24 }
 0x64b   : > { %s1197_s18 = smov %s1009_s21  ;;  %17 = sbr.rel (!%p15_p7) target bundleno = 4 (0x4), region = 76 }
 0x652   :  { %645 = vsyncpa [#allocation4], 1 }
 0x653   :  { %647 = vsyncpa [#allocation4 + $0x1], 1 }
 0x654   :  { %648 = vsyncpa [#allocation5], 1 }
 0x655   :  { %650 = vsyncpa [#allocation5 + $0x1], 1 }

</bundles_post_ra>
